<compile_context>
chip_gen: v6e
topology: v6e:2x2x1
jax: 0.10.0
libtpu: 0.0.40
codegen_flags: <defaults>
</compile_context>

<pallas_src>
import math
from functools import partial

import jax
import jax.numpy as jnp
from jax import lax
from jax.experimental import pallas as pl
from jax.experimental.pallas import tpu as pltpu


_GROUP = 8  # rows gathered per aligned (8, E) output store in the VMEM path


def _round_up(x: int, m: int) -> int:
    return ((x + m - 1) // m) * m


def _vmem_capacity_bytes() -> int:
    try:
        return int(pltpu.get_tpu_info().vmem_capacity_bytes)
    except Exception:
        return 64 * 1024 * 1024  # v7x-safe fallback (smallest VMEM generation)


# --------------------------------------------------------------------------
# Fast path: embedding table resident in VMEM, gather via dynamic slices.
# --------------------------------------------------------------------------
def _vmem_table_kernel(ids_ref, table_ref, out_ref, *, scale, tile_n):
    """ids_ref: (N_pad,) int32 in SMEM; table_ref: (V, E) resident in VMEM;
    out_ref: (tile_n, E) auto-pipelined output tile."""
    i = pl.program_id(0)
    base = i * tile_n

    def body(g, carry):
        start = base + g * _GROUP
        # _GROUP scalar id reads (SMEM) -> _GROUP dynamic (1, E) VMEM loads.
        rows = [table_ref[pl.ds(ids_ref[start + j], 1), :] for j in range(_GROUP)]
        blk = jnp.concatenate(rows, axis=0).astype(jnp.float32) * scale
        off = pl.multiple_of(g * _GROUP, _GROUP)
        out_ref[pl.ds(off, _GROUP), :] = blk.astype(out_ref.dtype)
        return carry

    lax.fori_loop(0, tile_n // _GROUP, body, 0, unroll=2)


# --------------------------------------------------------------------------
# Fallback: table stays in HBM; per-row DMAs double-buffered across steps.
# --------------------------------------------------------------------------
def _hbm_gather_kernel(ids_ref, table_hbm, out_ref, rows, sems, *, scale, tile_n):
    """rows: (2, tile_n, E) VMEM scratch (table dtype); sems: (2,) DMA sems."""
    i = pl.program_id(0)
    nsteps = pl.num_programs(0)
    slot = i % 2

    def issue(step, s):
        base = step * tile_n

        def body(j, carry):
            idx = ids_ref[base + j]                        # scalar SMEM read
            pltpu.make_async_copy(
                table_hbm.at[pl.ds(idx, 1)],               # (1, E) row in HBM
                rows.at[s, pl.ds(j, 1)],                   # (1, E) slot in VMEM
                sems.at[s],                                # shared per-slot sem
            ).start()
            return carry

        lax.fori_loop(0, tile_n, body, 0, unroll=4)

    # First step primes its own slot; every step prefetches the NEXT tile's
    # rows (reading next-tile ids from SMEM) BEFORE waiting on the current
    # slot, so the random-row HBM latency is hidden behind the previous step.
    @pl.when(i == 0)
    def _():
        issue(0, slot)

    @pl.when(i + 1 < nsteps)
    def _():
        issue(i + 1, 1 - slot)

    # Single combined wait: the tile_n row copies all signal sems[slot]; a wait
    # descriptor sized (tile_n, E) consumes exactly tile_n * E * itemsize bytes.
    pltpu.make_async_copy(rows.at[slot], rows.at[slot], sems.at[slot]).wait()

    out_ref[...] = (rows[slot].astype(jnp.float32) * scale).astype(out_ref.dtype)


# --------------------------------------------------------------------------
# Wrapper
# --------------------------------------------------------------------------
def token_embedding(tokens: jax.Array, emb_table: jax.Array, *,
                    out_dtype=jnp.float32, tile_n: int = 256,
                    force_hbm_table: bool = False) -> jax.Array:
    """tokens: (seq_len, batch) int -> (seq_len, batch, emb_size) out_dtype.

    Equivalent to nn.Embedding(vocab, emb)(tokens.long()) * sqrt(emb_size).
    NOTE: out-of-range ids are clamped to [0, vocab-1] (torch would raise).
    """
    seq_len, batch = tokens.shape
    vocab_size, emb_size = emb_table.shape
    n = seq_len * batch
    scale = float(math.sqrt(emb_size))

    out_dtype = jnp.dtype(out_dtype)
    tbl_itemsize = jnp.dtype(emb_table.dtype).itemsize
    out_itemsize = out_dtype.itemsize

    ids = jnp.clip(tokens.reshape(n).astype(jnp.int32), 0, vocab_size - 1)

    # ---- tile sizing (generation-aware) -----------------------------------
    mult = 16                                   # bf16 sublane packing + _GROUP
    vmem_cap = _vmem_capacity_bytes()
    budget = int(0.6 * vmem_cap)                # leave pipeline headroom

    # Keep >= ~8 grid steps when there are enough tokens (v7x megacore),
    # but never below one 16-row tile.
    cap_for_grid = max(mult, _round_up(pl.cdiv(n, 8), mult))
    tile_n = max(mult, min(_round_up(tile_n, mult), cap_for_grid))

    table_bytes = vocab_size * emb_size * tbl_itemsize

    def fits(t):
        out_buf = 2 * t * emb_size * out_itemsize            # double-buffered out
        if (not force_hbm_table
                and 2 * table_bytes + out_buf + (4 << 20) <= budget):
            return True, True                                 # VMEM-resident table
        rows_buf = 2 * t * emb_size * tbl_itemsize            # double-buffered rows
        return out_buf + rows_buf + (4 << 20) <= budget, False

    ok, use_vmem_table = fits(tile_n)
    while not ok and tile_n > mult:
        tile_n = max(mult, (tile_n // 2) // mult * mult)
        ok, use_vmem_table = fits(tile_n)

    if not use_vmem_table:
        # Cap in-flight per-row DMA descriptors per slot.
        tile_n = min(tile_n, 128)

    n_pad = _round_up(n, tile_n)
    if n_pad != n:
        ids = jnp.pad(ids, (0, n_pad - n))      # padded ids -> row 0 (sliced off)
    grid = (n_pad // tile_n,)

    out_tile_bytes = tile_n * emb_size * out_itemsize

    if use_vmem_table:
        kernel = partial(_vmem_table_kernel, scale=scale, tile_n=tile_n)
        in_specs = [
            # Whole table resident in VMEM: constant block index -> fetched once.
            pl.BlockSpec((vocab_size, emb_size), lambda i, ids: (0, 0)),
        ]
        scratch_shapes = []
        semantics = ("parallel",)               # token tiles are independent
        needed = 2 * table_bytes + 2 * out_tile_bytes
        bytes_in = table_bytes
    else:
        kernel = partial(_hbm_gather_kernel, scale=scale, tile_n=tile_n)
        in_specs = [pl.BlockSpec(memory_space=pl.ANY)]   # table stays in HBM
        scratch_shapes = [
            pltpu.VMEM((2, tile_n, emb_size), emb_table.dtype),
            pltpu.SemaphoreType.DMA((2,)),
        ]
        # Cross-step DMA prefetch carries state between grid steps -> sequential.
        semantics = ("arbitrary",)
        needed = 2 * tile_n * emb_size * (out_itemsize + tbl_itemsize)
        bytes_in = n_pad * emb_size * tbl_itemsize

    vmem_limit = int(min(0.9 * vmem_cap, max(needed + (8 << 20), 32 << 20)))

    cost = pl.CostEstimate(
        flops=2 * n_pad * emb_size,             # cast + scale, mem-bound anyway
        transcendentals=0,
        bytes_accessed=bytes_in + n_pad * emb_size * out_itemsize + n_pad * 4,
    )

    out_flat = pl.pallas_call(
        kernel,
        out_shape=jax.ShapeDtypeStruct((n_pad, emb_size), out_dtype),
        grid_spec=pltpu.PrefetchScalarGridSpec(
            num_scalar_prefetch=1,              # token ids -> SMEM
            grid=grid,
            in_specs=in_specs,
            out_specs=pl.BlockSpec((tile_n, emb_size), lambda i, ids: (i, 0)),
            scratch_shapes=scratch_shapes,
        ),
        compiler_params=pltpu.CompilerParams(
            dimension_semantics=semantics,
            vmem_limit_bytes=vmem_limit,
        ),
        cost_estimate=cost,
    )(ids, emb_table)

    return out_flat[:n].reshape(seq_len, batch, emb_size)


if __name__ == "__main__":
    vocab_size = 64
    emb_size = 128       # multiple of 128 -> lane-dense output stores
    seq_len = 8
    batch = 2

    key = jax.random.PRNGKey(0)
    k_emb, k_tok = jax.random.split(key)

    # nn.Embedding default init: weights ~ N(0, 1), f32.
    emb_table = jax.random.normal(k_emb, (vocab_size, emb_size), dtype=jnp.float32)
    tokens = jax.random.randint(k_tok, (seq_len, batch), 0, vocab_size,
                                dtype=jnp.int32)

    scale = math.sqrt(emb_size)
    ref = emb_table[tokens] * scale

    # 1) VMEM-resident-table fast path, f32 table -> f32 out.
    out = jax.block_until_ready(token_embedding(tokens, emb_table))
    assert out.shape == (seq_len, batch, emb_size)
    assert jnp.allclose(out, ref, atol=1e-5, rtol=1e-5)

    # 2) bf16-stored table, f32 out (cast + scale in-kernel).
    emb_bf16 = emb_table.astype(jnp.bfloat16)
    out_b = jax.block_until_ready(token_embedding(tokens, emb_bf16))
    ref_b = emb_bf16[tokens].astype(jnp.float32) * scale
    assert jnp.allclose(out_b, ref_b, atol=1e-5, rtol=1e-5)

    # 3) bf16 output (halves writeback traffic for bf16 models).
    out_bf16 = jax.block_until_ready(
        token_embedding(tokens, emb_table, out_dtype=jnp.bfloat16))
    assert out_bf16.dtype == jnp.bfloat16
    assert jnp.allclose(out_bf16.astype(jnp.float32), ref, atol=2e-2, rtol=2e-2)

    # 4) Forced HBM-gather fallback (double-buffered per-row DMAs).
    out_hbm = jax.block_until_ready(
        token_embedding(tokens, emb_table, force_hbm_table=True))
    assert jnp.allclose(out_hbm, ref, atol=1e-5, rtol=1e-5)

    print("KERNEL_OK")
</pallas_src>

<mosaic_0001>
module attributes {stable_mosaic.version = 11 : i64} {
  func.func @_vmem_table_kernel(%arg0: i32, %arg1: memref<16xi32, #tpu.memory_space<smem>>, %arg2: memref<64x128xf32, #tpu.memory_space<vmem>>, %arg3: memref<16x128xf32, #tpu.memory_space<vmem>>) attributes {dimension_semantics = [#tpu.dimension_semantics<parallel>], iteration_bounds = array<i64: 1>, scalar_prefetch = 1 : i64, scratch_operands = 0 : i64, tpu.core_type = #tpu.core_type<tc>, window_params = [{pipeline_mode = #tpu.pipeline_mode<synchronous>, transform_indices = @transform_0, window_bounds = array<i64: 64, 128>}, {transform_indices = @transform_1, window_bounds = array<i64: 16, 128>}]} {
    %c16_i32 = arith.constant 16 : i32
    %0 = arith.muli %arg0, %c16_i32 : i32
    %c0_i32 = arith.constant 0 : i32
    %c8_i32 = arith.constant 8 : i32
    %1 = arith.muli %c0_i32, %c8_i32 : i32
    %2 = arith.addi %0, %1 : i32
    %c0_i32_0 = arith.constant 0 : i32
    %3 = arith.addi %2, %c0_i32_0 : i32
    %4 = arith.index_cast %3 : i32 to index
    %5 = memref.load %arg1[%4] : memref<16xi32, #tpu.memory_space<smem>>
    %6 = arith.index_cast %5 : i32 to index
    %c0 = arith.constant 0 : index
    %7 = vector.load %arg2[%6, %c0] : memref<64x128xf32, #tpu.memory_space<vmem>>, vector<1x128xf32>
    %c1_i32 = arith.constant 1 : i32
    %8 = arith.addi %2, %c1_i32 : i32
    %9 = arith.index_cast %8 : i32 to index
    %10 = memref.load %arg1[%9] : memref<16xi32, #tpu.memory_space<smem>>
    %11 = arith.index_cast %10 : i32 to index
    %c0_1 = arith.constant 0 : index
    %12 = vector.load %arg2[%11, %c0_1] : memref<64x128xf32, #tpu.memory_space<vmem>>, vector<1x128xf32>
    %c2_i32 = arith.constant 2 : i32
    %13 = arith.addi %2, %c2_i32 : i32
    %14 = arith.index_cast %13 : i32 to index
    %15 = memref.load %arg1[%14] : memref<16xi32, #tpu.memory_space<smem>>
    %16 = arith.index_cast %15 : i32 to index
    %c0_2 = arith.constant 0 : index
    %17 = vector.load %arg2[%16, %c0_2] : memref<64x128xf32, #tpu.memory_space<vmem>>, vector<1x128xf32>
    %c3_i32 = arith.constant 3 : i32
    %18 = arith.addi %2, %c3_i32 : i32
    %19 = arith.index_cast %18 : i32 to index
    %20 = memref.load %arg1[%19] : memref<16xi32, #tpu.memory_space<smem>>
    %21 = arith.index_cast %20 : i32 to index
    %c0_3 = arith.constant 0 : index
    %22 = vector.load %arg2[%21, %c0_3] : memref<64x128xf32, #tpu.memory_space<vmem>>, vector<1x128xf32>
    %c4_i32 = arith.constant 4 : i32
    %23 = arith.addi %2, %c4_i32 : i32
    %24 = arith.index_cast %23 : i32 to index
    %25 = memref.load %arg1[%24] : memref<16xi32, #tpu.memory_space<smem>>
    %26 = arith.index_cast %25 : i32 to index
    %c0_4 = arith.constant 0 : index
    %27 = vector.load %arg2[%26, %c0_4] : memref<64x128xf32, #tpu.memory_space<vmem>>, vector<1x128xf32>
    %c5_i32 = arith.constant 5 : i32
    %28 = arith.addi %2, %c5_i32 : i32
    %29 = arith.index_cast %28 : i32 to index
    %30 = memref.load %arg1[%29] : memref<16xi32, #tpu.memory_space<smem>>
    %31 = arith.index_cast %30 : i32 to index
    %c0_5 = arith.constant 0 : index
    %32 = vector.load %arg2[%31, %c0_5] : memref<64x128xf32, #tpu.memory_space<vmem>>, vector<1x128xf32>
    %c6_i32 = arith.constant 6 : i32
    %33 = arith.addi %2, %c6_i32 : i32
    %34 = arith.index_cast %33 : i32 to index
    %35 = memref.load %arg1[%34] : memref<16xi32, #tpu.memory_space<smem>>
    %36 = arith.index_cast %35 : i32 to index
    %c0_6 = arith.constant 0 : index
    %37 = vector.load %arg2[%36, %c0_6] : memref<64x128xf32, #tpu.memory_space<vmem>>, vector<1x128xf32>
    %c7_i32 = arith.constant 7 : i32
    %38 = arith.addi %2, %c7_i32 : i32
    %39 = arith.index_cast %38 : i32 to index
    %40 = memref.load %arg1[%39] : memref<16xi32, #tpu.memory_space<smem>>
    %41 = arith.index_cast %40 : i32 to index
    %c0_7 = arith.constant 0 : index
    %42 = vector.load %arg2[%41, %c0_7] : memref<64x128xf32, #tpu.memory_space<vmem>>, vector<1x128xf32>
    %43 = tpu.concatenate %7, %12, %17, %22, %27, %32, %37, %42 in 0 : vector<1x128xf32>, vector<1x128xf32>, vector<1x128xf32>, vector<1x128xf32>, vector<1x128xf32>, vector<1x128xf32>, vector<1x128xf32>, vector<1x128xf32> -> vector<8x128xf32>
    %cst = arith.constant 11.3137083 : f32
    %44 = vector.broadcast %cst : f32 to vector<8x128xf32>
    %45 = arith.mulf %43, %44 : vector<8x128xf32>
    %c8_i32_8 = arith.constant 8 : i32
    %46 = arith.muli %c0_i32, %c8_i32_8 : i32
    %47 = tpu.assume_multiple %46, 8 : i32
    %48 = arith.index_cast %47 : i32 to index
    %c0_9 = arith.constant 0 : index
    %49 = vector.load %arg3[%48, %c0_9] : memref<16x128xf32, #tpu.memory_space<vmem>>, vector<8x128xf32>
    tpu.vector_store %arg3[%48, %c0_9], %45 {strides = array<i32>} : memref<16x128xf32, #tpu.memory_space<vmem>>, vector<8x128xf32>,
    %c1_i32_10 = arith.constant 1 : i32
    %c8_i32_11 = arith.constant 8 : i32
    %50 = arith.muli %c1_i32_10, %c8_i32_11 : i32
    %51 = arith.addi %0, %50 : i32
    %c0_i32_12 = arith.constant 0 : i32
    %52 = arith.addi %51, %c0_i32_12 : i32
    %53 = arith.index_cast %52 : i32 to index
    %54 = memref.load %arg1[%53] : memref<16xi32, #tpu.memory_space<smem>>
    %55 = arith.index_cast %54 : i32 to index
    %c0_13 = arith.constant 0 : index
    %56 = vector.load %arg2[%55, %c0_13] : memref<64x128xf32, #tpu.memory_space<vmem>>, vector<1x128xf32>
    %c1_i32_14 = arith.constant 1 : i32
    %57 = arith.addi %51, %c1_i32_14 : i32
    %58 = arith.index_cast %57 : i32 to index
    %59 = memref.load %arg1[%58] : memref<16xi32, #tpu.memory_space<smem>>
    %60 = arith.index_cast %59 : i32 to index
    %c0_15 = arith.constant 0 : index
    %61 = vector.load %arg2[%60, %c0_15] : memref<64x128xf32, #tpu.memory_space<vmem>>, vector<1x128xf32>
    %c2_i32_16 = arith.constant 2 : i32
    %62 = arith.addi %51, %c2_i32_16 : i32
    %63 = arith.index_cast %62 : i32 to index
    %64 = memref.load %arg1[%63] : memref<16xi32, #tpu.memory_space<smem>>
    %65 = arith.index_cast %64 : i32 to index
    %c0_17 = arith.constant 0 : index
    %66 = vector.load %arg2[%65, %c0_17] : memref<64x128xf32, #tpu.memory_space<vmem>>, vector<1x128xf32>
    %c3_i32_18 = arith.constant 3 : i32
    %67 = arith.addi %51, %c3_i32_18 : i32
    %68 = arith.index_cast %67 : i32 to index
    %69 = memref.load %arg1[%68] : memref<16xi32, #tpu.memory_space<smem>>
    %70 = arith.index_cast %69 : i32 to index
    %c0_19 = arith.constant 0 : index
    %71 = vector.load %arg2[%70, %c0_19] : memref<64x128xf32, #tpu.memory_space<vmem>>, vector<1x128xf32>
    %c4_i32_20 = arith.constant 4 : i32
    %72 = arith.addi %51, %c4_i32_20 : i32
    %73 = arith.index_cast %72 : i32 to index
    %74 = memref.load %arg1[%73] : memref<16xi32, #tpu.memory_space<smem>>
    %75 = arith.index_cast %74 : i32 to index
    %c0_21 = arith.constant 0 : index
    %76 = vector.load %arg2[%75, %c0_21] : memref<64x128xf32, #tpu.memory_space<vmem>>, vector<1x128xf32>
    %c5_i32_22 = arith.constant 5 : i32
    %77 = arith.addi %51, %c5_i32_22 : i32
    %78 = arith.index_cast %77 : i32 to index
    %79 = memref.load %arg1[%78] : memref<16xi32, #tpu.memory_space<smem>>
    %80 = arith.index_cast %79 : i32 to index
    %c0_23 = arith.constant 0 : index
    %81 = vector.load %arg2[%80, %c0_23] : memref<64x128xf32, #tpu.memory_space<vmem>>, vector<1x128xf32>
    %c6_i32_24 = arith.constant 6 : i32
    %82 = arith.addi %51, %c6_i32_24 : i32
    %83 = arith.index_cast %82 : i32 to index
    %84 = memref.load %arg1[%83] : memref<16xi32, #tpu.memory_space<smem>>
    %85 = arith.index_cast %84 : i32 to index
    %c0_25 = arith.constant 0 : index
    %86 = vector.load %arg2[%85, %c0_25] : memref<64x128xf32, #tpu.memory_space<vmem>>, vector<1x128xf32>
    %c7_i32_26 = arith.constant 7 : i32
    %87 = arith.addi %51, %c7_i32_26 : i32
    %88 = arith.index_cast %87 : i32 to index
    %89 = memref.load %arg1[%88] : memref<16xi32, #tpu.memory_space<smem>>
    %90 = arith.index_cast %89 : i32 to index
    %c0_27 = arith.constant 0 : index
    %91 = vector.load %arg2[%90, %c0_27] : memref<64x128xf32, #tpu.memory_space<vmem>>, vector<1x128xf32>
    %92 = tpu.concatenate %56, %61, %66, %71, %76, %81, %86, %91 in 0 : vector<1x128xf32>, vector<1x128xf32>, vector<1x128xf32>, vector<1x128xf32>, vector<1x128xf32>, vector<1x128xf32>, vector<1x128xf32>, vector<1x128xf32> -> vector<8x128xf32>
    %cst_28 = arith.constant 11.3137083 : f32
    %93 = vector.broadcast %cst_28 : f32 to vector<8x128xf32>
    %94 = arith.mulf %92, %93 : vector<8x128xf32>
    %c8_i32_29 = arith.constant 8 : i32
    %95 = arith.muli %c1_i32_10, %c8_i32_29 : i32
    %96 = tpu.assume_multiple %95, 8 : i32
    %97 = arith.index_cast %96 : i32 to index
    %c0_30 = arith.constant 0 : index
    %98 = vector.load %arg3[%97, %c0_30] : memref<16x128xf32, #tpu.memory_space<vmem>>, vector<8x128xf32>
    tpu.vector_store %arg3[%97, %c0_30], %94 {strides = array<i32>} : memref<16x128xf32, #tpu.memory_space<vmem>>, vector<8x128xf32>,
    %c2_i32_31 = arith.constant 2 : i32
    return
  }
  func.func @transform_0(%arg0: i32, %arg1: memref<16xi32, #tpu.memory_space<smem>>) -> (i32, i32) {
    %c0_i32 = arith.constant 0 : i32
    %c0_i32_0 = arith.constant 0 : i32
    %c0_i32_1 = arith.constant 0 : i32
    return %c0_i32, %c0_i32_0 : i32, i32
  }
  func.func @transform_1(%arg0: i32, %arg1: memref<16xi32, #tpu.memory_space<smem>>) -> (i32, i32) {
    %c0_i32 = arith.constant 0 : i32
    %c0_i32_0 = arith.constant 0 : i32
    return %arg0, %c0_i32 : i32, i32
  }
}

</mosaic_0001>

<bundles_post_ra>
// kernel: tpu_custom_call.1
= control target key start
LH: loop header
LB: loop body
LE: loop exit
PB: predicated region body
PF: predicated region fallthrough
CT: control target
= control target key end

     0   :  { %s267_s9 = smov [#allocation3]   ;;  %s337_s0 = inlined_call_operand.hbm [shape: s32[16], index: 0, kind: input, shape index: {}]   ;;  %s338_s1 = inlined_call_operand.hbm [shape: f32[64,128], index: 1, kind: input, shape index: {}]   ;;  %s339_s2 = inlined_call_operand.hbm [shape: f32[16,128], index: 2, kind: output, shape index: {}]  }
   0x1   :  { %8 = dma.hbm_to_smem %s337_s0, 16, %s267_s9, [#allocation2] }
   0x2   :  { %261 = dma.done.wait [#allocation2], 16 }
   0x3   :  { %262 = vsyncadd [#allocation2], 4294967280 }
   0x4   :  { %10 = sfence }
   0x5   :  { %11 = vsyncpa [#allocation5], 0 }
   0x6   :  { %12 = vsyncpa [#allocation6], 0  ;;  %s268_s12 = smov [#allocation4]  }
   0x7   :  { %s18_s13 = sshll.u32 %s268_s12, 4  ;;  %s19_s13 = int_to_ptr.vmem [resolvable:$true] %s18_s13 }
   0x8   :  { %s229_s14 = scalar_lea.vmem %s19_s13, 1024  ;;  %p234_p1 = scmp.lt.s32.totalorder %s19_s13, %s19_s13 }
   0x9   :  { %p230_p0 = scmp.ne.s32.totalorder %s19_s13, %s229_s14  ;;  %p235_p2 = scmp.lt.s32.totalorder %s229_s14, %s229_s14 }
   0xb   :  { %p236_p3 = por %p235_p2, %p234_p1 }
   0xd   :  { %p237_p4 = pnand %p236_p3, %p230_p0 }
   0xf   :  { %240 = shalt.err (!%p237_p4)
}
  0x10   :  { %s269_s15 = smov 128   ;;  %s270_s16 = smov 8  }
  0x11   :  { %24 = dma.hbm_to_vmem [thread:$0]  %s338_s1, 1024, %s19_s13, [#allocation5], %s269_s15, %s269_s15, %s270_s16  }
  0x12   :  { %263 = dma.done.wait [#allocation5], 1024  }
  0x13   :  { %264 = vsyncadd [#allocation5], 4294966272  ;;  %s29_s18 = sld [smem:[#allocation3]]  ;;  %vm81_vm0 = vcmask 1040384   ;;  %vm83_vm1 = vcmask 1041408   ;;  %vm85_vm2 = vcmask 1042432  }
  0x14   :  { %s193_s19 = sld [smem:[#allocation3 + $0x1]]  ;;  %vm87_vm3 = vcmask 1043456   ;;  %vm89_vm4 = vcmask 1044480   ;;  %vm91_vm5 = vcmask 1045504   ;;  %vm93_vm6 = vcmask 1046528  }
  0x15   :  { %s194_s20 = sld [smem:[#allocation3 + $0x2]] }
  0x16   :  { %s195_s21 = sld [smem:[#allocation3 + $0x3]] }
  0x17   :  { %s196_s22 = sld [smem:[#allocation3 + $0x4]] }
  0x18   :  { %s296_s23 = sld [smem:[#allocation3 + $0x5]] }
  0x19   :  { %s298_s24 = sld [smem:[#allocation3 + $0x6]]  ;;  %s30_s25 = scalar_lea.vmem [#allocation4], %s29_s18 }
  0x1a   :  { %v31_v0 = vld [vmem:[%s30_s25] sm:$0x1]  ;;  %s300_s26 = sld [smem:[#allocation3 + $0x7]]  ;;  %s34_s1 = scalar_lea.vmem [#allocation4], %s193_s19 }
  0x1b   :  { %v35_v1 = vld [vmem:[%s34_s1] sm:$0x1]  ;;  %s302_s27 = sld [smem:[#allocation3 + $0x8]]  ;;  %s38_s28 = scalar_lea.vmem [#allocation4], %s194_s20 }
  0x1c   :  { %v39_v2 = vld [vmem:[%s38_s28] sm:$0x1]  ;;  %v61_v3 = vrot.slane %v35_v1, 7  ;;  %s304_s29 = sld [smem:[#allocation3 + $0x9]]  ;;  %s42_s30 = scalar_lea.vmem [#allocation4], %s195_s21 }
  0x1d   :  { %v43_v4 = vld [vmem:[%s42_s30] sm:$0x1]  ;;  %v64_v5 = vrot.slane %v39_v2, 6  ;;  %s306_s3 = sld [smem:[#allocation3 + $0xa]]  ;;  %s46_s4 = scalar_lea.vmem [#allocation4], %s196_s22 }
  0x1e   :  { %v47_v6 = vld [vmem:[%s46_s4] sm:$0x1]  ;;  %v67_v7 = vrot.slane %v43_v4, 5  ;;  %v82_v8 = vsel %vm81_vm0, %v31_v0, %v61_v3  ;;  %s309_s5 = sld [smem:[#allocation3 + $0xb]]  ;;  %s50_s6 = scalar_lea.vmem [#allocation4], %s296_s23 }
  0x1f   :  { %v51_v9 = vld [vmem:[%s50_s6] sm:$0x1]  ;;  %v70_v10 = vrot.slane %v47_v6, 4  ;;  %v84_v11 = vsel %vm83_vm1, %v82_v8, %v64_v5  ;;  %s204_s7 = sld [smem:[#allocation3 + $0xc]]  ;;  %s54_s8 = scalar_lea.vmem [#allocation4], %s298_s24 }
  0x20   :  { %v55_v12 = vld [vmem:[%s54_s8] sm:$0x1]  ;;  %v73_v13 = vrot.slane %v51_v9, 3  ;;  %v86_v14 = vsel %vm85_vm2, %v84_v11, %v67_v7  ;;  %s205_s9 = sld [smem:[#allocation3 + $0xd]]  ;;  %s58_s10 = scalar_lea.vmem [#allocation4], %s300_s26 }
  0x21   :  { %v59_v15 = vld [vmem:[%s58_s10] sm:$0x1]  ;;  %v76_v16 = vrot.slane %v55_v12, 2  ;;  %v88_v17 = vsel %vm87_vm3, %v86_v14, %v70_v10  ;;  %s206_s11 = sld [smem:[#allocation3 + $0xe]]  ;;  %s99_s13 = scalar_lea.vmem [#allocation4], %s302_s27 }
  0x22   :  { %v79_v18 = vrot.slane %v59_v15, 1  ;;  %v90_v19 = vsel %vm89_vm4, %v88_v17, %v73_v13  ;;  %s207_s12 = sld [smem:[#allocation3 + $0xf]]  ;;  %v100_v21 = vld [vmem:[%s99_s13] sm:$0x1]  ;;  %s103_s14 = scalar_lea.vmem [#allocation4], %s304_s29 }
  0x23   :  { %v92_v20 = vsel %vm91_vm5, %v90_v19, %v76_v16  ;;  %v104_v22 = vld [vmem:[%s103_s14] sm:$0x1]  ;;  %s107_s0 = scalar_lea.vmem [#allocation4], %s306_s3  ;;  %s271_s22 = smov [#allocation7]  }
  0x24   :  { %v94_v23 = vsel %vm93_vm6, %v92_v20, %v79_v18  ;;  %v108_v24 = vld [vmem:[%s107_s0] sm:$0x1]  ;;  %v130_v25 = vrot.slane %v104_v22, 7  ;;  %s111_s17 = scalar_lea.vmem [#allocation4], %s309_s5  ;;  %s165_s23 = sshll.u32 %s271_s22, 4  ;;  %s166_s23 = int_to_ptr.vmem [resolvable:$true] %s165_s23 }
  0x25   :  { %v95_v26 = vmul.f32 11.313708, %v94_v23  ;;  %v112_v27 = vld [vmem:[%s111_s17] sm:$0x1]  ;;  %v133_v28 = vrot.slane %v108_v24, 6  ;;  %s115_s18 = scalar_lea.vmem [#allocation4], %s204_s7  ;;  %p246_p6 = scmp.lt.s32.totalorder %s166_s23, %s166_s23 }
  0x26   :  { %v116_v29 = vld [vmem:[%s115_s18] sm:$0x1]  ;;  %v136_v30 = vrot.slane %v112_v27, 5  ;;  %v150_v31 = vsel %vm81_vm0, %v100_v21, %v130_v25  ;;  %s119_s19 = scalar_lea.vmem [#allocation4], %s205_s9  ;;  %s241_s24 = scalar_lea.vmem %s166_s23, 256 }
  0x27   :  { %96 = vst [vmem:[#allocation7] sm:$0xff] %v95_v26  ;;  %v120_v32 = vld [vmem:[%s119_s19] sm:$0x1]  ;;  %v139_v33 = vrot.slane %v116_v29, 4  ;;  %v151_v34 = vsel %vm83_vm1, %v150_v31, %v133_v28  ;;  %s123_s20 = scalar_lea.vmem [#allocation4], %s206_s11  ;;  %p242_p5 = scmp.ne.s32.totalorder %s166_s23, %s241_s24 }
  0x28   :  { %v124_v35 = vld [vmem:[%s123_s20] sm:$0x1]  ;;  %v142_v36 = vrot.slane %v120_v32, 3  ;;  %v152_v37 = vsel %vm85_vm2, %v151_v34, %v136_v30  ;;  %s127_s21 = scalar_lea.vmem [#allocation4], %s207_s12  ;;  %p247_p7 = scmp.lt.s32.totalorder %s241_s24, %s241_s24 }
  0x29   :  { %v128_v38 = vld [vmem:[%s127_s21] sm:$0x1]  ;;  %v145_v39 = vrot.slane %v124_v35, 2  ;;  %v153_v40 = vsel %vm87_vm3, %v152_v37, %v139_v33 }
  0x2a   :  { %v148_v41 = vrot.slane %v128_v38, 1  ;;  %v154_v42 = vsel %vm89_vm4, %v153_v40, %v142_v36  ;;  %p248_p8 = por %p247_p7, %p246_p6 }
  0x2b   :  { %v155_v43 = vsel %vm91_vm5, %v154_v42, %v145_v39 }
  0x2c   :  { %v156_v44 = vsel %vm93_vm6, %v155_v43, %v148_v41  ;;  %p249_p9 = pnand %p248_p8, %p242_p5 }
  0x2d   :  { %v157_v45 = vmul.f32 11.313708, %v156_v44 }
  0x2f   :  { %159 = vst [vmem:[#allocation7 + $0x8] sm:$0xff] %v157_v45 }
  0x30   :  { %252 = shalt.err (!%p249_p9)
}
  0x31   :  { %171 = dma.vmem_to_hbm [thread:$0]  %s166_s23, 256, %s339_s2, [#allocation6], %s269_s15, %s269_s15, %s270_s16  }
  0x32   :  { %265 = dma.done.wait [#allocation6], 256  }
  0x33   :  { %266 = vsyncadd [#allocation6], 4294967040 }
  0x34   :  { %175 = vsyncpa [#allocation5], 1 }
  0x35   :  { %176 = vsyncpa [#allocation6], 1 }

</bundles_post_ra>
